<compile_context>
chip_gen: v7x
topology: tpu7x:2x2x1
jax: 0.10.0
libtpu: 0.0.40
codegen_flags: <defaults>
</compile_context>

<pallas_src>
import functools

import jax
import jax.numpy as jnp
from jax import lax
from jax.experimental import pallas as pl
from jax.experimental.pallas import tpu as pltpu


def _round_up(x, m):
    return ((x + m - 1) // m) * m


def _cdiv(a, b):
    return (a + b - 1) // b


@functools.partial(jax.jit, static_argnames=("batch_tile", "inner_chunk"))
def menu_recommendation_forward(x, params, *, batch_tile=16384, inner_chunk=256):
    """Forward pass of MenuRecommendationNet.

    x:      (B, input_size) float32, natural row-major layout (read directly, no
            wrapper transpose / pad / cast -> no extra HBM pass).
    params: w{i} as (out, in) (PyTorch layout), b{i} as (out, 1), float32.
    Returns (B, 1) float32, matching the PyTorch module's forward.
    """
    batch, input_size = x.shape

    # ---- static tiling decisions -------------------------------------------
    inner_chunk = max(128, _round_up(inner_chunk, 128))
    # Inner sub-tile (rows per inner-loop iteration): bounds live vreg pressure.
    chunk = min(inner_chunk, _round_up(batch, 8))
    # Batch rows per grid step: as big as the VMEM budget allows (amortizes the
    # fixed per-step pipeline overhead), but
    #   * no bigger than the (chunk-rounded) batch,
    #   * capped at ~half the batch so the grid has >=2 steps for v7x's 2 TCs.
    tb = max(chunk, min(_round_up(batch_tile, chunk),
                        _round_up(_cdiv(batch, 2), chunk),
                        _round_up(batch, chunk)))
    n_chunks = tb // chunk
    grid = (_cdiv(batch, tb),)   # ragged last block handled by Pallas masking

    w1, b1 = params["w1"], params["b1"]
    w2, b2 = params["w2"], params["b2"]
    w3, b3 = params["w3"], params["b3"]
    w4, b4 = params["w4"], params["b4"]
    w_args = (w1, b1, w2, b2, w3, b3, w4, b4)

    def kernel(x_ref, w1_ref, b1_ref, w2_ref, b2_ref, w3_ref, b3_ref,
               w4_ref, b4_ref, o_ref):
        # x_ref: (tb, input_size) in natural batch-major layout.
        def body(j, carry):
            off = j * chunk
            if chunk % 128 == 0:
                off = pl.multiple_of(off, 128)
            xc = x_ref[pl.ds(off, chunk), :]                     # (chunk, in) f32
            # Feature-major (lane-dense) math: batch rides the 128-wide lane axis.
            # The (chunk, in) -> (in, chunk) flip runs on the otherwise-idle XLU
            # and hides under the x DMA.
            h = jnp.dot(w1_ref[...], xc.T,
                        preferred_element_type=jnp.float32) + b1_ref[...]
            h = jnp.maximum(h, 0.0)                              # (16, chunk)
            h = jnp.dot(w2_ref[...], h,
                        preferred_element_type=jnp.float32) + b2_ref[...]
            h = jnp.maximum(h, 0.0)                              # (32, chunk)
            h = jnp.dot(w3_ref[...], h,
                        preferred_element_type=jnp.float32) + b3_ref[...]
            h = jnp.maximum(h, 0.0)                              # (16, chunk)
            logits = jnp.dot(w4_ref[...], h,
                             preferred_element_type=jnp.float32) + b4_ref[...]
            # Lane-dense (1, chunk) store (chunk is a multiple of 128 whenever the
            # inner loop has more than one iteration).
            o_ref[:, pl.ds(off, chunk)] = jax.nn.sigmoid(logits)
            return carry

        unroll = 2 if (n_chunks > 1 and n_chunks % 2 == 0) else 1
        lax.fori_loop(0, n_chunks, body, 0, unroll=unroll)

    # x / out are blocked along the batch axis; weights & biases get constant
    # block indices so they stay VMEM-resident across the whole grid (~7 KiB).
    x_spec = pl.BlockSpec((tb, input_size), lambda i: (i, 0))
    const_spec = lambda a: pl.BlockSpec(a.shape, lambda i: (0, 0))
    in_specs = [x_spec] + [const_spec(a) for a in w_args]
    out_spec = pl.BlockSpec((1, tb), lambda i: (0, i))

    flops = 2 * batch * (input_size * 16 + 16 * 32 + 32 * 16 + 16 * 1)
    bytes_accessed = (batch * input_size * 4 + batch * 4
                      + sum(int(a.size) * 4 for a in w_args))

    out_t = pl.pallas_call(
        kernel,
        out_shape=jax.ShapeDtypeStruct((1, batch), jnp.float32),
        grid=grid,
        in_specs=in_specs,
        out_specs=out_spec,
        compiler_params=pltpu.CompilerParams(
            dimension_semantics=("parallel",),   # batch axis -> both v7x TCs
            vmem_limit_bytes=32 * 1024 * 1024,   # fits v5e/v6e/v7x scoped VMEM
        ),
        cost_estimate=pl.CostEstimate(
            flops=flops, transcendentals=batch, bytes_accessed=bytes_accessed),
    )(x, *w_args)

    return out_t[0, :].reshape(batch, 1)


def init_params(key, input_size):
    """PyTorch-default-style init.  Weights stored (out, in), biases (out, 1)."""
    dims = [(input_size, 16), (16, 32), (32, 16), (16, 1)]
    params = {}
    for idx, (fan_in, fan_out) in enumerate(dims, start=1):
        key, kw, kb = jax.random.split(key, 3)
        bound = 1.0 / (fan_in ** 0.5)
        params[f"w{idx}"] = jax.random.uniform(
            kw, (fan_out, fan_in), jnp.float32, minval=-bound, maxval=bound)
        params[f"b{idx}"] = jax.random.uniform(
            kb, (fan_out, 1), jnp.float32, minval=-bound, maxval=bound)
    return params


def reference_forward(x, params):
    """Pure-JAX f32 reference matching the PyTorch module exactly."""
    h = jnp.maximum(x @ params["w1"].T + params["b1"].T, 0.0)
    h = jnp.maximum(h @ params["w2"].T + params["b2"].T, 0.0)
    h = jnp.maximum(h @ params["w3"].T + params["b3"].T, 0.0)
    return jax.nn.sigmoid(h @ params["w4"].T + params["b4"].T)


# TODO(synk): initialize_weights(preferences) is a host-side weight-mutation helper
# (not part of forward); set params["w1"] columns in the params dict instead.

if __name__ == "__main__":
    key = jax.random.PRNGKey(0)
    batch, input_size = 8, 32

    key, kx, kp = jax.random.split(key, 3)
    x = jax.random.normal(kx, (batch, input_size), jnp.float32)
    params = init_params(kp, input_size)

    out = menu_recommendation_forward(x, params)
    jax.block_until_ready(out)
    ref = reference_forward(x, params)
    assert out.shape == (batch, 1)
    assert jnp.allclose(out, ref, atol=1e-3, rtol=1e-3), float(
        jnp.max(jnp.abs(out - ref)))

    # Larger, ragged, multi-grid-step case (exercises inner loop + masked last block).
    batch2 = 3000
    kx2, _ = jax.random.split(kx)
    x2 = jax.random.normal(kx2, (batch2, input_size), jnp.float32)
    out2 = menu_recommendation_forward(x2, params)
    jax.block_until_ready(out2)
    ref2 = reference_forward(x2, params)
    assert out2.shape == (batch2, 1)
    assert jnp.allclose(out2, ref2, atol=1e-3, rtol=1e-3), float(
        jnp.max(jnp.abs(out2 - ref2)))

    print("KERNEL_OK")
</pallas_src>

<mosaic_0001>
module attributes {stable_mosaic.version = 11 : i64} {
  func.func @kernel(%arg0: i32, %arg1: memref<8x32xf32, #tpu.memory_space<vmem>>, %arg2: memref<16x32xf32, #tpu.memory_space<vmem>>, %arg3: memref<16x1xf32, #tpu.memory_space<vmem>>, %arg4: memref<32x16xf32, #tpu.memory_space<vmem>>, %arg5: memref<32x1xf32, #tpu.memory_space<vmem>>, %arg6: memref<16x32xf32, #tpu.memory_space<vmem>>, %arg7: memref<16x1xf32, #tpu.memory_space<vmem>>, %arg8: memref<1x16xf32, #tpu.memory_space<vmem>>, %arg9: memref<1x1xf32, #tpu.memory_space<vmem>>, %arg10: memref<1x8xf32, #tpu.memory_space<vmem>>) attributes {dimension_semantics = [#tpu.dimension_semantics<parallel>], iteration_bounds = array<i64: 1>, scalar_prefetch = 0 : i64, scratch_operands = 0 : i64, tpu.core_type = #tpu.core_type<tc>, window_params = [{transform_indices = @transform_0, window_bounds = array<i64: 8, 32>}, {pipeline_mode = #tpu.pipeline_mode<synchronous>, transform_indices = @transform_1, window_bounds = array<i64: 16, 32>}, {pipeline_mode = #tpu.pipeline_mode<synchronous>, transform_indices = @transform_2, window_bounds = array<i64: 16, 1>}, {pipeline_mode = #tpu.pipeline_mode<synchronous>, transform_indices = @transform_3, window_bounds = array<i64: 32, 16>}, {pipeline_mode = #tpu.pipeline_mode<synchronous>, transform_indices = @transform_4, window_bounds = array<i64: 32, 1>}, {pipeline_mode = #tpu.pipeline_mode<synchronous>, transform_indices = @transform_5, window_bounds = array<i64: 16, 32>}, {pipeline_mode = #tpu.pipeline_mode<synchronous>, transform_indices = @transform_6, window_bounds = array<i64: 16, 1>}, {pipeline_mode = #tpu.pipeline_mode<synchronous>, transform_indices = @transform_7, window_bounds = array<i64: 1, 16>}, {pipeline_mode = #tpu.pipeline_mode<synchronous>, transform_indices = @transform_8, window_bounds = array<i64: 1, 1>}, {transform_indices = @transform_9, window_bounds = array<i64: 1, 8>}]} {
    %c0_i32 = arith.constant 0 : i32
    %c8_i32 = arith.constant 8 : i32
    %0 = arith.muli %c0_i32, %c8_i32 : i32
    %1 = arith.index_cast %0 : i32 to index
    %c0 = arith.constant 0 : index
    %2 = vector.load %arg1[%1, %c0] : memref<8x32xf32, #tpu.memory_space<vmem>>, vector<8x32xf32>
    %c0_0 = arith.constant 0 : index
    %c0_1 = arith.constant 0 : index
    %3 = vector.load %arg2[%c0_0, %c0_1] : memref<16x32xf32, #tpu.memory_space<vmem>>, vector<16x32xf32>
    %4 = tpu.transpose %2, [1, 0] : vector<8x32xf32> -> vector<32x8xf32>
    %cst = arith.constant dense<0.000000e+00> : vector<16x8xf32>
    %5 = tpu.matmul %3, %4, %cst {dimension_numbers = #tpu.dot_dimension_numbers<[1], [0], [0], [1], [0, 0, 1, 1], [], []>} : vector<16x32xf32>, vector<32x8xf32>, vector<16x8xf32> -> vector<16x8xf32>
    %c0_2 = arith.constant 0 : index
    %c0_3 = arith.constant 0 : index
    %6 = vector.load %arg3[%c0_2, %c0_3] : memref<16x1xf32, #tpu.memory_space<vmem>>, vector<16x1xf32>
    %7 = vector.broadcast %6 : vector<16x1xf32> to vector<16x8xf32>
    %8 = arith.addf %5, %7 : vector<16x8xf32>
    %cst_4 = arith.constant 0.000000e+00 : f32
    %9 = vector.broadcast %cst_4 : f32 to vector<16x8xf32>
    %10 = arith.maximumf %8, %9 : vector<16x8xf32>
    %c0_5 = arith.constant 0 : index
    %c0_6 = arith.constant 0 : index
    %11 = vector.load %arg4[%c0_5, %c0_6] : memref<32x16xf32, #tpu.memory_space<vmem>>, vector<32x16xf32>
    %cst_7 = arith.constant dense<0.000000e+00> : vector<32x8xf32>
    %12 = tpu.matmul %11, %10, %cst_7 {dimension_numbers = #tpu.dot_dimension_numbers<[1], [0], [0], [1], [0, 0, 1, 1], [], []>} : vector<32x16xf32>, vector<16x8xf32>, vector<32x8xf32> -> vector<32x8xf32>
    %c0_8 = arith.constant 0 : index
    %c0_9 = arith.constant 0 : index
    %13 = vector.load %arg5[%c0_8, %c0_9] : memref<32x1xf32, #tpu.memory_space<vmem>>, vector<32x1xf32>
    %14 = vector.broadcast %13 : vector<32x1xf32> to vector<32x8xf32>
    %15 = arith.addf %12, %14 : vector<32x8xf32>
    %cst_10 = arith.constant 0.000000e+00 : f32
    %16 = vector.broadcast %cst_10 : f32 to vector<32x8xf32>
    %17 = arith.maximumf %15, %16 : vector<32x8xf32>
    %c0_11 = arith.constant 0 : index
    %c0_12 = arith.constant 0 : index
    %18 = vector.load %arg6[%c0_11, %c0_12] : memref<16x32xf32, #tpu.memory_space<vmem>>, vector<16x32xf32>
    %cst_13 = arith.constant dense<0.000000e+00> : vector<16x8xf32>
    %19 = tpu.matmul %18, %17, %cst_13 {dimension_numbers = #tpu.dot_dimension_numbers<[1], [0], [0], [1], [0, 0, 1, 1], [], []>} : vector<16x32xf32>, vector<32x8xf32>, vector<16x8xf32> -> vector<16x8xf32>
    %c0_14 = arith.constant 0 : index
    %c0_15 = arith.constant 0 : index
    %20 = vector.load %arg7[%c0_14, %c0_15] : memref<16x1xf32, #tpu.memory_space<vmem>>, vector<16x1xf32>
    %21 = vector.broadcast %20 : vector<16x1xf32> to vector<16x8xf32>
    %22 = arith.addf %19, %21 : vector<16x8xf32>
    %cst_16 = arith.constant 0.000000e+00 : f32
    %23 = vector.broadcast %cst_16 : f32 to vector<16x8xf32>
    %24 = arith.maximumf %22, %23 : vector<16x8xf32>
    %c0_17 = arith.constant 0 : index
    %c0_18 = arith.constant 0 : index
    %25 = vector.load %arg8[%c0_17, %c0_18] : memref<1x16xf32, #tpu.memory_space<vmem>>, vector<1x16xf32>
    %cst_19 = arith.constant dense<0.000000e+00> : vector<1x8xf32>
    %26 = tpu.matmul %25, %24, %cst_19 {dimension_numbers = #tpu.dot_dimension_numbers<[1], [0], [0], [1], [0, 0, 1, 1], [], []>} : vector<1x16xf32>, vector<16x8xf32>, vector<1x8xf32> -> vector<1x8xf32>
    %c0_20 = arith.constant 0 : index
    %c0_21 = arith.constant 0 : index
    %27 = vector.load %arg9[%c0_20, %c0_21] : memref<1x1xf32, #tpu.memory_space<vmem>>, vector<1x1xf32>
    %28 = vector.broadcast %27 : vector<1x1xf32> to vector<1x8xf32>
    %29 = arith.addf %26, %28 : vector<1x8xf32>
    %30 = arith.negf %29 : vector<1x8xf32>
    %31 = math.exp %30 : vector<1x8xf32>
    %cst_22 = arith.constant 1.000000e+00 : f32
    %32 = vector.broadcast %cst_22 : f32 to vector<1x8xf32>
    %33 = arith.addf %32, %31 : vector<1x8xf32>
    %34 = arith.divf %32, %33 : vector<1x8xf32>
    %c0_23 = arith.constant 0 : index
    %35 = arith.index_cast %0 : i32 to index
    %36 = vector.load %arg10[%c0_23, %35] : memref<1x8xf32, #tpu.memory_space<vmem>>, vector<1x8xf32>
    tpu.vector_store %arg10[%c0_23, %35], %34 {strides = array<i32>} : memref<1x8xf32, #tpu.memory_space<vmem>>, vector<1x8xf32>,
    %c1_i32 = arith.constant 1 : i32
    return
  }
  func.func @transform_0(%arg0: i32) -> (i32, i32) {
    %c0_i32 = arith.constant 0 : i32
    %c0_i32_0 = arith.constant 0 : i32
    return %arg0, %c0_i32 : i32, i32
  }
  func.func @transform_1(%arg0: i32) -> (i32, i32) {
    %c0_i32 = arith.constant 0 : i32
    %c0_i32_0 = arith.constant 0 : i32
    %c0_i32_1 = arith.constant 0 : i32
    return %c0_i32, %c0_i32_0 : i32, i32
  }
  func.func @transform_2(%arg0: i32) -> (i32, i32) {
    %c0_i32 = arith.constant 0 : i32
    %c0_i32_0 = arith.constant 0 : i32
    %c0_i32_1 = arith.constant 0 : i32
    return %c0_i32, %c0_i32_0 : i32, i32
  }
  func.func @transform_3(%arg0: i32) -> (i32, i32) {
    %c0_i32 = arith.constant 0 : i32
    %c0_i32_0 = arith.constant 0 : i32
    %c0_i32_1 = arith.constant 0 : i32
    return %c0_i32, %c0_i32_0 : i32, i32
  }
  func.func @transform_4(%arg0: i32) -> (i32, i32) {
    %c0_i32 = arith.constant 0 : i32
    %c0_i32_0 = arith.constant 0 : i32
    %c0_i32_1 = arith.constant 0 : i32
    return %c0_i32, %c0_i32_0 : i32, i32
  }
  func.func @transform_5(%arg0: i32) -> (i32, i32) {
    %c0_i32 = arith.constant 0 : i32
    %c0_i32_0 = arith.constant 0 : i32
    %c0_i32_1 = arith.constant 0 : i32
    return %c0_i32, %c0_i32_0 : i32, i32
  }
  func.func @transform_6(%arg0: i32) -> (i32, i32) {
    %c0_i32 = arith.constant 0 : i32
    %c0_i32_0 = arith.constant 0 : i32
    %c0_i32_1 = arith.constant 0 : i32
    return %c0_i32, %c0_i32_0 : i32, i32
  }
  func.func @transform_7(%arg0: i32) -> (i32, i32) {
    %c0_i32 = arith.constant 0 : i32
    %c0_i32_0 = arith.constant 0 : i32
    %c0_i32_1 = arith.constant 0 : i32
    return %c0_i32, %c0_i32_0 : i32, i32
  }
  func.func @transform_8(%arg0: i32) -> (i32, i32) {
    %c0_i32 = arith.constant 0 : i32
    %c0_i32_0 = arith.constant 0 : i32
    %c0_i32_1 = arith.constant 0 : i32
    return %c0_i32, %c0_i32_0 : i32, i32
  }
  func.func @transform_9(%arg0: i32) -> (i32, i32) {
    %c0_i32 = arith.constant 0 : i32
    %c0_i32_0 = arith.constant 0 : i32
    return %c0_i32, %arg0 : i32, i32
  }
}

</mosaic_0001>

<bundles_post_ra>
// kernel: menu_recommendation_forward.1
= control target key start
LH: loop header
LB: loop body
LE: loop exit
PB: predicated region body
PF: predicated region fallthrough
CT: control target
= control target key end

     0   :  { %s717_s0 = inlined_call_operand.vmem [shape: f32[8,32], index: 0, kind: input, shape index: {}]   ;;  %s718_s1 = inlined_call_operand.vmem [shape: f32[16,32], index: 1, kind: input, shape index: {}]   ;;  %s719_s2 = inlined_call_operand.vmem [shape: f32[16,1], index: 2, kind: input, shape index: {}]   ;;  %s720_s3 = inlined_call_operand.vmem [shape: f32[32,16], index: 3, kind: input, shape index: {}]   ;;  %s721_s4 = inlined_call_operand.vmem [shape: f32[32,1], index: 4, kind: input, shape index: {}]   ;;  %s722_s5 = inlined_call_operand.vmem [shape: f32[16,32], index: 5, kind: input, shape index: {}]   ;;  %s723_s6 = inlined_call_operand.vmem [shape: f32[16,1], index: 6, kind: input, shape index: {}]   ;;  %s724_s7 = inlined_call_operand.vmem [shape: f32[1,16], index: 7, kind: input, shape index: {}]   ;;  %s725_s8 = inlined_call_operand.<no memory space> [shape: f32[1,1], index: 8, kind: input, shape index: {}]   ;;  %s726_s9 = inlined_call_operand.hbm [shape: f32[1,8], index: 9, kind: output, shape index: {}]  }
   0x1   :  { %v14_v0 = vstv %s725_s8 }
   0x2   :  { %15 = vst [vmem:[#allocation2] sm:$0x1] %v14_v0 }
   0x3   :  { %v35_v1 = vld [vmem:[%s717_s0] sm:$0xff]  ;;  %vm50_vm0 = vcmask 261120   ;;  %v37_v4 = vld [vmem:[%s718_s1 + $0x8] sm:$0xff]  ;;  %v582_v5 = vmov 0  }
   0x4   :  { %v36_v2 = vld [vmem:[%s718_s1] sm:$0xff]  ;;  %499 = vmatprep.subr.msk.mxu0 %vm50_vm0, %v35_v1  ;;  %552 = vset.pattern.permute.xlu0 %v582_v5 }
   0x5   :  { %501 = vmatprep.mubr.msk.f32.mxu0 %vm50_vm0, %v36_v2  ;;  %v38_v3 = vld [vmem:[%s719_s2] sm:$0xff]  ;;  %500 = vmatpush3.xpose.msk.msra.mxu0 %vm50_vm0, %v35_v1 }
   0x6   :  { %16 = vsyncpa [#allocation4], 0  ;;  %42 = vperm.xlu0 %552, %v38_v3   ;;  %553 = vset.pattern.permute.xlu1 %v582_v5  ;;  %v39_v6 = vld [vmem:[%s719_s2 + $0x8] sm:$0xff]  ;;  %v143_v7 = vld [vmem:[%s721_s4 + $0x10] sm:$0xff]  ;;  %vm165_vm1 = vcmask 130048   ;;  %v583_v47 = vmov 0.0|0.0   ;;  %v371_v59 = vlaneseq }
   0x7   :  { %v269_v8 = vld [vmem:[%s723_s6] sm:$0xff]  ;;  %v142_v12 = vld [vmem:[%s721_s4 + $0x8] sm:$0xff]  ;;  %v144_v13 = vld [vmem:[%s721_s4 + $0x18] sm:$0xff]  ;;  %vm584_vm2 = vmmov 0   ;;  %v585_v48 = vmov 0.0   ;;  %vm454_vm3 = vcmask 57344  }
   0x8   :  { %502 = vmatmul.mubr.msk.f32.vlgmr.msra.gmra.mrb[0].mxu0 %vm50_vm0, %v37_v4  ;;  %v137_v10 = vld [vmem:[%s720_s3] sm:$0xff]  ;;  %v270_v14 = vld [vmem:[%s723_s6 + $0x8] sm:$0xff]  ;;  %v139_v25 = vld [vmem:[%s720_s3 + $0x10] sm:$0xff]  ;;  %v372_v60 = vshrl.u32 %v371_v59, 7 }
   0x9   :  { %v365_v9 = vld [vmem:[#allocation2] sm:$0x1]  ;;  %508 = vmatprep.mubr.msk.f32.mxu1 %vm165_vm1, %v137_v10  ;;  %v138_v24 = vld [vmem:[%s720_s3 + $0x8] sm:$0xff]  ;;  %v140_v26 = vld [vmem:[%s720_s3 + $0x18] sm:$0xff] }
   0xa   :  { %47 = vperm.xlu0 %552, %v39_v6   ;;  %v141_v11 = vld [vmem:[%s721_s4] sm:$0xff]  ;;  %v268_v46 = vld [vmem:[%s722_s5 + $0x8] sm:$0xff]  ;;  %v373_v61 = vsub.s32 0, %v372_v60 }
   0xb   :  { %147 = vperm.xlu1 %553, %v141_v11   ;;  %v267_v27 = vld [vmem:[%s722_s5] sm:$0xff]  ;;  %s586_s5 = smov [#allocation3]  }
   0xc   :  { %522 = vmatprep.mubr.msk.f32.mxu0 %vm50_vm0, %v267_v27  ;;  %v364_v58 = vld [vmem:[%s724_s7] sm:$0x1]  ;;  %s462_s0 = sshll.u32 %s586_s5, 4  ;;  %s463_s0 = int_to_ptr.vmem [resolvable:$true] %s462_s0 }
   0xd   :  { %s558_s7 = scalar_lea.vmem %s463_s0, 16  ;;  %s562_s18 = scalar_lea.vmem %s463_s0, 32 }
   0xe   :  { %157 = vperm.xlu0 %552, %v143_v7   ;;  %p559_p0 = scmp.ne.s32.totalorder %s463_s0, %s558_s7  ;;  %p563_p1 = scmp.lt.s32.totalorder %s463_s0, %s463_s0 }
   0xf   :  { %152 = vperm.xlu1 %553, %v142_v12   ;;  %p564_p2 = scmp.lt.s32.totalorder %s562_s18, %s558_s7 }
  0x11   :  { %p565_p3 = por %p564_p2, %p563_p1 }
  0x12   :  { %273 = vperm.xlu0 %552, %v269_v8  }
  0x13   :  { %162 = vperm.xlu1 %553, %v144_v13   ;;  %p566_p4 = pnand %p565_p3, %p559_p0 }
  0x16   :  { %368 = vperm.xlu0 %552, %v365_v9  }
  0x17   :  { %278 = vperm.xlu1 %553, %v270_v14  }
  0x85   :  { %v43_v15 = vpop.permute.xlu0 %42 }
  0x89   :  { %v48_v16 = vpop.permute.xlu0 %47 }
  0x8a   :  { %v148_v28 = vpop.permute.xlu1 %147 }
  0x8d   :  { %v158_v38 = vpop.permute.xlu0 %157 }
  0x8e   :  { %v153_v29 = vpop.permute.xlu1 %152 }
  0x91   :  { %v274_v51 = vpop.permute.xlu0 %273 }
  0x92   :  { %v163_v35 = vpop.permute.xlu1 %162 }
  0x95   :  { %v369_v62 = vpop.permute.xlu0 %368 }
  0x96   :  { %v279_v49 = vpop.permute.xlu1 %278  ;;  %v374_v63 = vrot.slane %v369_v62, %v373_v61 }
  0xdb   :  { %v503_v17 = vpop.f32.mrb[0].mxu0 }
  0xdc   :  { %v132_v18 = vadd.f32 %v503_v17, %v48_v16  ;;  %v126_v19 = vpop.f32.mrb[1].mxu0 }
  0xdd   :  { %v127_v20 = vadd.f32 %v126_v19, %v43_v15 }
  0xde   :  { %v136_v21 = vmax.f32 %v132_v18, 0.0 }
  0xdf   :  { %v135_v22 = vmax.f32 %v127_v20, 0.0 }
  0xe1   :  { %v532_v23 = vpack.c.bf16 %v136_v21, %v135_v22 }
  0xe3   :  { %533 = vmatprep.subr.bf16.mxu1 %v532_v23 }
  0xe4   :  { %535 = vmatpush3.bf16.msra.mxu1 %v532_v23 }
  0xe5   :  { %544 = vmatprep.subr.bf16.mxu1 %v583_v47 }
  0xe7   :  { %509 = vmatmul.mubr.msk.f32.vlgmr.msra.gmra.mrb[0].mxu1 %vm165_vm1, %v138_v24 }
  0xe8   :  { %511 = vmatprep.mubr.msk.f32.mxu1 %vm165_vm1, %v139_v25 }
  0xeb   :  { %512 = vmatmul.mubr.msk.f32.gmra.mrb[2].mxu1 %vm165_vm1, %v140_v26 }
  0xec   :  { %529 = vmatprep.mubr.msk.f32.mxu1 %vm584_vm2, %v585_v48 }
 0x1ba   :  { %v510_v30 = vpop.f32.mrb[0].mxu1 }
 0x1bb   :  { %v250_v31 = vadd.f32 %v510_v30, %v153_v29  ;;  %v244_v32 = vpop.f32.mrb[1].mxu1 }
 0x1bc   :  { %v245_v33 = vadd.f32 %v244_v32, %v148_v28 }
 0x1bd   :  { %v264_v34 = vmax.f32 %v250_v31, 0.0 }
 0x1be   :  { %v263_v36 = vmax.f32 %v245_v33, 0.0  ;;  %v513_v37 = vpop.f32.mrb[2].mxu1 }
 0x1bf   :  { %v260_v39 = vadd.f32 %v513_v37, %v163_v35  ;;  %v254_v40 = vpop.f32.mrb[3].mxu1 }
 0x1c0   :  { %v536_v41 = vpack.c.bf16 %v264_v34, %v263_v36  ;;  %v255_v42 = vadd.f32 %v254_v40, %v158_v38 }
 0x1c1   :  { %v266_v43 = vmax.f32 %v260_v39, 0.0 }
 0x1c2   :  { %v265_v44 = vmax.f32 %v255_v42, 0.0  ;;  %537 = vmatprep.subr.bf16.mxu0 %v536_v41 }
 0x1c3   :  { %539 = vmatpush3.bf16.msra.mxu0 %v536_v41 }
 0x1c4   :  { %v540_v45 = vpack.c.bf16 %v266_v43, %v265_v44 }
 0x1c6   :  { %541 = vmatprep.subr.bf16.mxu0 %v540_v45 }
 0x1c7   :  { %543 = vmatpush3.bf16.msra.mxu0 %v540_v45 }
 0x1ca   :  { %523 = vmatmul.mubr.msk.f32.vlgmr.msra.gmra.mrb[2].mxu0 %vm50_vm0, %v268_v46 }
 0x29d   :  { %v524_v50 = vpop.f32.mrb[2].mxu0 }
 0x29e   :  { %v359_v52 = vadd.f32 %v524_v50, %v279_v49  ;;  %v353_v53 = vpop.f32.mrb[3].mxu0 }
 0x29f   :  { %v354_v54 = vadd.f32 %v353_v53, %v274_v51 }
 0x2a0   :  { %v363_v55 = vmax.f32 %v359_v52, 0.0 }
 0x2a1   :  { %v362_v56 = vmax.f32 %v354_v54, 0.0 }
 0x2a3   :  { %v545_v57 = vpack.c.bf16 %v363_v55, %v362_v56 }
 0x2a5   :  { %546 = vmatpush3.bf16.msra.mxu1 %v545_v57 }
 0x2a8   :  { %530 = vmatmul.mubr.msk.f32.vlgmr.msra.gmra.mrb[4].mxu1 %vm165_vm1, %v364_v58 }
 0x37b   :  { %v444_v0 = vpop.f32.mrb[4].mxu1 }
 0x37c   :  { %v445_v1 = vadd.f32 %v444_v0, %v374_v63  ;;  %v531_v2 = vpop.f32.mrb[5].mxu1 }
 0x37e   :  { %v480_v3 = vmul.f32 -1.442695, %v445_v1 }
 0x380   :  { %554 = vpow2.f32 %v480_v3 }
 0x38a   :  { %v555_v4 = vpop.eup %554 }
 0x38b   :  { %v451_v5 = vadd.f32 1.0, %v555_v4 }
 0x38d   :  { %556 = vrcp.f32 %v451_v5 }
 0x397   :  { %v557_v6 = vpop.eup %556 }
 0x398   :  { %455 = vst.msk [vmem:[#allocation3] sm:$0x1] %vm454_vm3, %v557_v6 }
 0x399   :  { %569 = shalt.err (!%p566_p4)
}
 0x39a   :  { %s570_s21 = scalar_lea.hbm %s726_s9, 16 }
 0x39b   :  { %p571_p5 = scmp.ne.s32.totalorder %s726_s9, %s570_s21  ;;  %p574_p6 = scmp.lt.u32.totalorder %s570_s21, %s726_s9 }
 0x39d   :  { %p576_p7 = pnand %p574_p6, %p571_p5 }
 0x39f   :  { %579 = shalt.err (!%p576_p7)
}
 0x3a0   :  { %465 = dma.vmem_to_hbm [thread:$0]  %s463_s0, 16, %s726_s9, [#allocation4]  }
 0x3a1   :  { %580 = dma.done.wait [#allocation4], 16  }
 0x3a2   :  { %581 = vsyncadd [#allocation4], 4294967280 }
 0x3a3   :  { %469 = vsyncpa [#allocation4], 1 }

</bundles_post_ra>
